<compile_context>
chip_gen: v7x
topology: tpu7x:2x2x1
jax: 0.10.0
libtpu: 0.0.40
codegen_flags: <defaults>
</compile_context>

<pallas_src>
import jax
import jax.numpy as jnp
from jax.experimental import pallas as pl
from jax.experimental.pallas import tpu as pltpu


# ------------------------------- small helpers -------------------------------

def _cdiv(a, b):
    return -(-a // b)


def _round_up(x, m):
    return _cdiv(x, m) * m


def _balanced_tile(dim, max_tile, align):
    """Largest tile <= ~max_tile (aligned) that bounds padding waste to < align."""
    max_tile = max(max_tile, align)
    dim_a = _round_up(dim, align)
    if dim_a <= max_tile:
        return dim_a
    nblk = _cdiv(dim, max_tile)
    return _round_up(_cdiv(dim, nblk), align)


def _tpu_generation():
    try:
        kind = jax.devices()[0].device_kind.lower()
    except Exception:
        return 0
    for g in (7, 6, 5, 4):
        if ("v%d" % g) in kind:
            return g
    return 0


def _default_linear_config():
    gen = _tpu_generation()
    if gen in (5, 6):
        # v5e / v6e: 128 MiB physical VMEM -> big tiles, generous scoped limit.
        return dict(tm=512, tn=512, tk=1024, vmem_limit_bytes=96 * 1024 * 1024)
    # v7x has only 64 MiB VMEM per TensorCore (and unknown chips): stay conservative.
    return dict(tm=256, tn=256, tk=512, vmem_limit_bytes=48 * 1024 * 1024)


_LINEAR_XLA_CUTOFF = 1 << 21   # M*N*K below this -> XLA fused dot
_GAIN_XLA_CUTOFF = 1 << 20     # B*T*U*X below this -> XLA einsum


# --------------------------- tiled linear: y = x @ w_t ---------------------------

def _mm_kernel_single_k(x_ref, w_ref, o_ref):
    # Whole reduction fits one block: no accumulator, single MXU pass.
    o_ref[...] = jnp.dot(
        x_ref[...], w_ref[...], preferred_element_type=jnp.float32
    ).astype(o_ref.dtype)


def _mm_kernel_acc(x_ref, w_ref, o_ref, acc_ref):
    # NOTE: correctness of this accumulator pattern REQUIRES the reduction axis to be the
    # LAST grid axis and the output index_map to be k-invariant (output block stays
    # resident in VMEM across all k steps).  Do not reorder the grid.
    @pl.when(pl.program_id(2) == 0)
    def _init():
        acc_ref[...] = jnp.zeros_like(acc_ref)

    acc_ref[...] += jnp.dot(
        x_ref[...], w_ref[...], preferred_element_type=jnp.float32
    )

    @pl.when(pl.program_id(2) == pl.num_programs(2) - 1)
    def _finalize():
        o_ref[...] = acc_ref[...].astype(o_ref.dtype)


def _prepare_weight(w_t, *, compute_dtype, tn, tk):
    """Cast + tile-pad the (K, N) weight once (hoisted out of the forward pass)."""
    K, N = w_t.shape
    sub_align = 16 if jnp.dtype(compute_dtype).itemsize == 2 else 8
    tn_e = _balanced_tile(N, tn, 128)    # lane dim of w & out
    tk_e = _balanced_tile(K, tk, 128)    # lane dim of x, sublane dim of w
    Kp, Np = _round_up(K, tk_e), _round_up(N, tn_e)
    wp = jnp.pad(w_t.astype(compute_dtype), ((0, Kp - K), (0, Np - N)))
    meta = dict(K=K, N=N, Kp=Kp, Np=Np, tn_e=tn_e, tk_e=tk_e, sub_align=sub_align)
    return wp, meta


def _linear_prepared(x, wp, meta, *, tm, vmem_limit_bytes):
    """y[M, N] = x[M, K] @ w_t[K, N] with a pre-cast / pre-padded weight."""
    M, K = x.shape
    assert K == meta["K"]
    N, Kp, Np = meta["N"], meta["Kp"], meta["Np"]
    tn_e, tk_e, sub = meta["tn_e"], meta["tk_e"], meta["sub_align"]

    tm_e = _balanced_tile(M, tm, sub)
    Mp = _round_up(M, tm_e)
    xp = jnp.pad(x.astype(wp.dtype), ((0, Mp - M), (0, Kp - K)))
    nm, nn, nk = Mp // tm_e, Np // tn_e, Kp // tk_e

    isz = jnp.dtype(wp.dtype).itemsize
    cost = pl.CostEstimate(
        flops=2 * Mp * Np * Kp,
        transcendentals=0,
        bytes_accessed=int(Mp * Kp * isz * nn + Kp * Np * isz * nm + Mp * Np * 4),
    )

    if nk == 1:
        # Reduction fits one block: drop the K grid axis and the accumulator entirely.
        kernel = _mm_kernel_single_k
        grid = (nm, nn)
        in_specs = [pl.BlockSpec((tm_e, Kp), lambda i, j: (i, 0)),
                    pl.BlockSpec((Kp, tn_e), lambda i, j: (0, j))]
        out_specs = pl.BlockSpec((tm_e, tn_e), lambda i, j: (i, j))
        scratch = []
        dims = ("parallel", "parallel")
    else:
        kernel = _mm_kernel_acc
        grid = (nm, nn, nk)              # reduction axis LAST (required, see kernel note)
        in_specs = [pl.BlockSpec((tm_e, tk_e), lambda i, j, k: (i, k)),
                    pl.BlockSpec((tk_e, tn_e), lambda i, j, k: (k, j))]
        out_specs = pl.BlockSpec((tm_e, tn_e), lambda i, j, k: (i, j))
        scratch = [pltpu.VMEM((tm_e, tn_e), jnp.float32)]
        dims = ("parallel", "parallel", "arbitrary")

    out = pl.pallas_call(
        kernel,
        out_shape=jax.ShapeDtypeStruct((Mp, Np), jnp.float32),
        grid_spec=pltpu.PrefetchScalarGridSpec(
            num_scalar_prefetch=0,
            grid=grid,
            in_specs=in_specs,
            out_specs=out_specs,
            scratch_shapes=scratch),
        compiler_params=pltpu.CompilerParams(
            dimension_semantics=dims,
            vmem_limit_bytes=vmem_limit_bytes),
        cost_estimate=cost,
    )(xp, wp)
    return out[:M, :N]


def pallas_linear(x, w_t, *, compute_dtype=jnp.bfloat16, tm=None, tn=None, tk=None,
                  vmem_limit_bytes=None, force_pallas=False):
    """y[M, N] = x[M, K] @ w_t[K, N] (nn.Linear, bias=False), f32 accumulate/output."""
    M, K = x.shape
    K2, N = w_t.shape
    assert K == K2

    cfg = _default_linear_config()
    tm = tm or cfg["tm"]
    tn = tn or cfg["tn"]
    tk = tk or cfg["tk"]
    vmem_limit_bytes = vmem_limit_bytes or cfg["vmem_limit_bytes"]

    # Tiny problems: launch + per-step overhead dwarfs the MACs -> use XLA's fused dot.
    if (not force_pallas) and (M * N * K < _LINEAR_XLA_CUTOFF):
        return jnp.dot(x.astype(compute_dtype), w_t.astype(compute_dtype),
                       preferred_element_type=jnp.float32)

    wp, meta = _prepare_weight(w_t, compute_dtype=compute_dtype, tn=tn, tk=tk)
    return _linear_prepared(x, wp, meta, tm=tm, vmem_limit_bytes=vmem_limit_bytes)


# ------------------- batched gain application: u = -(K @ x) -------------------

def _gain_kernel(k_ref, x_ref, o_ref):
    # k_ref: (Bblk, Up, X), x_ref: (Bblk, T, X), o_ref: (Bblk, T, Up)   (Up lane-dense)
    o_ref[...] = (
        -jnp.einsum('btx,bux->btu', x_ref[...], k_ref[...],
                    preferred_element_type=jnp.float32)
    ).astype(o_ref.dtype)


def pallas_apply_gain(kmat, x, *, compute_dtype=jnp.bfloat16, bblk=16,
                      force_pallas=False):
    """u[b, t, :] = -(K[b] @ x[b, t, :]);  kmat: (B, U, X), x: (B, T, X) -> (B, T, U)."""
    B, U, X = kmat.shape
    B2, T, X2 = x.shape
    assert B == B2 and X == X2

    kc = kmat.astype(compute_dtype)
    xc = x.astype(compute_dtype)

    # Tiny problems: route to XLA's fused einsum instead of paying a pallas_call launch.
    if (not force_pallas) and (B * T * U * X < _GAIN_XLA_CUTOFF):
        return -jnp.einsum('btx,bux->btu', xc, kc,
                           preferred_element_type=jnp.float32)

    # Lane-dense output: pad U (the output's last dim) to a multiple of 128 by zero-padding
    # K's U rows; padded outputs are exactly zero and sliced off outside.
    Up = _round_up(U, 128)
    Bblk = min(bblk, B)
    Bp = _round_up(B, Bblk)
    kp = jnp.pad(kc, ((0, Bp - B), (0, Up - U), (0, 0)))
    xp = jnp.pad(xc, ((0, Bp - B), (0, 0), (0, 0)))

    isz = jnp.dtype(compute_dtype).itemsize
    cost = pl.CostEstimate(
        flops=2 * Bp * T * Up * X,
        transcendentals=0,
        bytes_accessed=int(Bp * Up * X * isz + Bp * T * X * isz + Bp * T * Up * 4),
    )

    out = pl.pallas_call(
        _gain_kernel,
        out_shape=jax.ShapeDtypeStruct((Bp, T, Up), jnp.float32),
        grid_spec=pltpu.PrefetchScalarGridSpec(
            num_scalar_prefetch=0,
            grid=(Bp // Bblk,),
            in_specs=[pl.BlockSpec((Bblk, Up, X), lambda b: (b, 0, 0)),
                      pl.BlockSpec((Bblk, T, X), lambda b: (b, 0, 0))],
            out_specs=pl.BlockSpec((Bblk, T, Up), lambda b: (b, 0, 0))),
        compiler_params=pltpu.CompilerParams(
            dimension_semantics=("parallel",)),
        cost_estimate=cost,
    )(kp, xp)
    return out[:B, :, :U]


# ----------------------------------- module -----------------------------------

class Policy:
    """JAX/Pallas equivalent of the PyTorch Policy (LinearModule(z_dim, x_dim*u_dim); u=-K@x)."""

    def __init__(self, x_dim, u_dim, z_dim, key, compute_dtype=jnp.bfloat16):
        self.x_dim = x_dim
        self.u_dim = u_dim
        self.z_dim = z_dim
        self.compute_dtype = compute_dtype

        cfg = _default_linear_config()
        self._tm = cfg["tm"]
        self._vmem_limit = cfg["vmem_limit_bytes"]

        # nn.Linear default init -> U(-1/sqrt(in_features), 1/sqrt(in_features)).
        bound = 1.0 / (z_dim ** 0.5)
        w = jax.random.uniform(key, (x_dim * u_dim, z_dim), jnp.float32, -bound, bound)
        self.w = w                       # torch layout (out_features, in_features)
        self.w_t = jnp.transpose(w)      # (z_dim, x_dim*u_dim) so the kernel is z @ w_t

        # Hoisted out of the hot path: cast once (XLA-cutoff path) and cast+tile-pad once
        # (Pallas path), so forward never re-reads/re-writes the f32 weight.
        self.w_t_c = self.w_t.astype(compute_dtype)
        self.w_prepared, self.w_meta = _prepare_weight(
            self.w_t, compute_dtype=compute_dtype, tn=cfg["tn"], tk=cfg["tk"])

    def __call__(self, z, x, *, force_pallas=False):
        # z: (B, z_dim); x: (B, T, x_dim) -- T broadcasts against K.unsqueeze(1).
        B = z.shape[0]
        M, K, N = B, self.z_dim, self.u_dim * self.x_dim

        if (not force_pallas) and (M * N * K < _LINEAR_XLA_CUTOFF):
            k_flat = jnp.dot(z.astype(self.compute_dtype), self.w_t_c,
                             preferred_element_type=jnp.float32)
        else:
            k_flat = _linear_prepared(z, self.w_prepared, self.w_meta,
                                      tm=self._tm, vmem_limit_bytes=self._vmem_limit)

        kmat = k_flat.reshape(B, self.u_dim, self.x_dim)          # (B, u_dim, x_dim)
        return pallas_apply_gain(kmat, x,
                                 compute_dtype=self.compute_dtype,
                                 force_pallas=force_pallas)       # (B, T, u_dim)


if __name__ == "__main__":
    x_dim, u_dim, z_dim = 8, 4, 32
    B, T = 16, 8

    root = jax.random.PRNGKey(0)
    k_w, k_z, k_x, k_a, k_b = jax.random.split(root, 5)

    policy = Policy(x_dim, u_dim, z_dim, k_w)
    z = jax.random.normal(k_z, (B, z_dim), jnp.float32)
    x = jax.random.normal(k_x, (B, T, x_dim), jnp.float32)

    # Forced-Pallas path (exercises the single-K matmul kernel + the gain-apply kernel).
    u_pallas = jax.block_until_ready(policy(z, x, force_pallas=True))
    # Default path: the toy shapes take the XLA cutoffs (dot / einsum).
    u_auto = jax.block_until_ready(policy(z, x))
    assert u_pallas.shape == (B, T, u_dim)
    assert u_auto.shape == (B, T, u_dim)

    # Reference with the same bf16-operand / f32-accumulate matmul math as the kernels.
    k_ref = jnp.dot(z.astype(jnp.bfloat16), policy.w_t.astype(jnp.bfloat16),
                    preferred_element_type=jnp.float32).reshape(B, u_dim, x_dim)
    u_ref = -jnp.einsum('bux,btx->btu', k_ref, x)
    assert jnp.allclose(u_pallas, u_ref, atol=5e-2, rtol=5e-2)
    assert jnp.allclose(u_auto, u_ref, atol=5e-2, rtol=5e-2)

    # Loose sanity check against full-f32 (torch-style) semantics.
    k_f32 = (z @ policy.w_t).reshape(B, u_dim, x_dim)
    u_f32 = -jnp.einsum('bux,btx->btu', k_f32, x)
    assert jnp.allclose(u_pallas, u_f32, atol=1.5e-1, rtol=1.5e-1)

    # compute_dtype=float32 path (review correctness concern) -- runs the same kernels in f32.
    policy_f32 = Policy(x_dim, u_dim, z_dim, k_w, compute_dtype=jnp.float32)
    u_exact = jax.block_until_ready(policy_f32(z, x, force_pallas=True))
    assert jnp.allclose(u_exact, u_f32, atol=5e-2, rtol=5e-2)

    # Exercise the multi-K-step (accumulator) matmul path with explicit small tiles so the
    # same grid (2, 2, 4) runs on every chip generation.
    Mb, Kb, Nb = 256, 1024, 512
    xa = jax.random.normal(k_a, (Mb, Kb), jnp.float32)
    wb = jax.random.uniform(k_b, (Kb, Nb), jnp.float32, -0.05, 0.05)
    yb = jax.block_until_ready(
        pallas_linear(xa, wb, force_pallas=True, tm=128, tn=256, tk=256))
    yb_ref = jnp.dot(xa.astype(jnp.bfloat16), wb.astype(jnp.bfloat16),
                     preferred_element_type=jnp.float32)
    assert yb.shape == (Mb, Nb)
    assert jnp.allclose(yb, yb_ref, atol=1e-2, rtol=1e-2)

    # Chip-default tile config as well (single- or multi-K depending on generation).
    yc = jax.block_until_ready(pallas_linear(xa, wb, force_pallas=True))
    assert jnp.allclose(yc, yb_ref, atol=1e-2, rtol=1e-2)

    print("KERNEL_OK")
</pallas_src>

<mosaic_0001>
module attributes {stable_mosaic.version = 11 : i64} {
  func.func @_mm_kernel_single_k(%arg0: i32, %arg1: i32, %arg2: memref<16x128xbf16, #tpu.memory_space<vmem>>, %arg3: memref<128x128xbf16, #tpu.memory_space<vmem>>, %arg4: memref<16x128xf32, #tpu.memory_space<vmem>>) attributes {dimension_semantics = [#tpu.dimension_semantics<parallel>, #tpu.dimension_semantics<parallel>], iteration_bounds = array<i64: 1, 1>, scalar_prefetch = 0 : i64, scratch_operands = 0 : i64, tpu.core_type = #tpu.core_type<tc>, window_params = [{transform_indices = @transform_0, window_bounds = array<i64: 16, 128>}, {transform_indices = @transform_1, window_bounds = array<i64: 128, 128>}, {transform_indices = @transform_2, window_bounds = array<i64: 16, 128>}]} {
    %c0 = arith.constant 0 : index
    %c0_0 = arith.constant 0 : index
    %0 = vector.load %arg2[%c0, %c0_0] : memref<16x128xbf16, #tpu.memory_space<vmem>>, vector<16x128xbf16>
    %c0_1 = arith.constant 0 : index
    %c0_2 = arith.constant 0 : index
    %1 = vector.load %arg3[%c0_1, %c0_2] : memref<128x128xbf16, #tpu.memory_space<vmem>>, vector<128x128xbf16>
    %cst = arith.constant dense<0.000000e+00> : vector<16x128xf32>
    %2 = tpu.matmul %0, %1, %cst {dimension_numbers = #tpu.dot_dimension_numbers<[1], [0], [0], [1], [0, 0, 1, 1], [], []>} : vector<16x128xbf16>, vector<128x128xbf16>, vector<16x128xf32> -> vector<16x128xf32>
    %c0_3 = arith.constant 0 : index
    %c0_4 = arith.constant 0 : index
    %3 = vector.load %arg4[%c0_3, %c0_4] : memref<16x128xf32, #tpu.memory_space<vmem>>, vector<16x128xf32>
    tpu.vector_store %arg4[%c0_3, %c0_4], %2 {strides = array<i32>} : memref<16x128xf32, #tpu.memory_space<vmem>>, vector<16x128xf32>,
    return
  }
  func.func @transform_0(%arg0: i32, %arg1: i32) -> (i32, i32) {
    %c0_i32 = arith.constant 0 : i32
    %c0_i32_0 = arith.constant 0 : i32
    return %arg0, %c0_i32 : i32, i32
  }
  func.func @transform_1(%arg0: i32, %arg1: i32) -> (i32, i32) {
    %c0_i32 = arith.constant 0 : i32
    %c0_i32_0 = arith.constant 0 : i32
    return %c0_i32, %arg1 : i32, i32
  }
  func.func @transform_2(%arg0: i32, %arg1: i32) -> (i32, i32) {
    %c0_i32 = arith.constant 0 : i32
    return %arg0, %arg1 : i32, i32
  }
}

</mosaic_0001>

<bundles_post_ra>
// kernel: tpu_custom_call.1
= control target key start
LH: loop header
LB: loop body
LE: loop exit
PB: predicated region body
PF: predicated region fallthrough
CT: control target
= control target key end

     0   :  { %7 = vsyncpa [#allocation3], 0  ;;  %s362_s0 = inlined_call_operand.hbm [shape: bf16[16,128], index: 0, kind: input, shape index: {}]   ;;  %s363_s1 = inlined_call_operand.hbm [shape: bf16[128,128], index: 1, kind: input, shape index: {}]   ;;  %s364_s2 = inlined_call_operand.hbm [shape: f32[16,128], index: 2, kind: output, shape index: {}]  }
   0x1   :  { %8 = vsyncpa [#allocation6], 0 }
   0x2   :  { %9 = vsyncpa [#allocation4], 0  ;;  %s302_s9 = smov [#allocation2]   ;;  %s230_s13 = scalar_lea.hbm %s362_s0, 128 }
   0x3   :  { %s15_s10 = sshll.u32 %s302_s9, 4  ;;  %p231_p0 = scmp.ne.s32.totalorder %s362_s0, %s230_s13  ;;  %s16_s10 = int_to_ptr.vmem [resolvable:$true] %s15_s10 }
   0x4   :  { %p234_p1 = scmp.lt.u32.totalorder %s230_s13, %s362_s0 }
   0x6   :  { %p236_p2 = pnand %p234_p1, %p231_p0 }
   0x8   :  { %239 = shalt.err (!%p236_p2)
}
   0x9   :  { %s240_s18 = scalar_lea.vmem %s16_s10, 128  ;;  %p245_p4 = scmp.lt.s32.totalorder %s16_s10, %s16_s10 }
   0xa   :  { %p241_p3 = scmp.ne.s32.totalorder %s16_s10, %s240_s18  ;;  %p246_p5 = scmp.lt.s32.totalorder %s240_s18, %s240_s18 }
   0xc   :  { %p247_p6 = por %p246_p5, %p245_p4 }
   0xe   :  { %p248_p7 = pnand %p247_p6, %p241_p3 }
  0x10   :  { %251 = shalt.err (!%p248_p7)
}
  0x11   :  { %s303_s19 = smov 64   ;;  %s304_s20 = smov 4  }
  0x12   :  { %21 = dma.hbm_to_vmem [thread:$0]  %s362_s0, 128, %s16_s10, [#allocation3], %s303_s19, %s303_s19, %s304_s20  }
  0x13   :  { %s305_s23 = smov [#allocation5]   ;;  %s252_s27 = scalar_lea.hbm %s363_s1, 1024 }
  0x14   :  { %s27_s24 = sshll.u32 %s305_s23, 4  ;;  %p253_p8 = scmp.ne.s32.totalorder %s363_s1, %s252_s27  ;;  %s28_s24 = int_to_ptr.vmem [resolvable:$true] %s27_s24 }
  0x15   :  { %p256_p9 = scmp.lt.u32.totalorder %s252_s27, %s363_s1 }
  0x17   :  { %p258_p10 = pnand %p256_p9, %p253_p8 }
  0x19   :  { %261 = shalt.err (!%p258_p10)
}
  0x1a   :  { %s262_s4 = scalar_lea.vmem %s28_s24, 1024  ;;  %p267_p12 = scmp.lt.s32.totalorder %s28_s24, %s28_s24 }
  0x1b   :  { %p263_p11 = scmp.ne.s32.totalorder %s28_s24, %s262_s4  ;;  %p268_p13 = scmp.lt.s32.totalorder %s262_s4, %s262_s4 }
  0x1d   :  { %p269_p0 = por %p268_p13, %p267_p12 }
  0x1f   :  { %p270_p1 = pnand %p269_p0, %p263_p11 }
  0x21   :  { %273 = shalt.err (!%p270_p1)
}
  0x22   :  { %33 = dma.hbm_to_vmem [thread:$0]  %s363_s1, 1024, %s28_s24, [#allocation6], %s303_s19, %s303_s19, %s304_s20  }
  0x23   :  { %296 = dma.done.wait [#allocation3], 128  }
  0x24   :  { %297 = vsyncadd [#allocation3], 4294967168 }
  0x25   :  { %298 = dma.done.wait [#allocation6], 1024  }
  0x26   :  { %299 = vsyncadd [#allocation6], 4294966272  ;;  %v306_v0 = vmov 0.0   ;;  %vm307_vm0 = vmmov 0   ;;  %v221_v1 = vld [vmem:[#allocation5] sm:$0xff]   ;;  %v222_v2 = vld [vmem:[#allocation5 + $0x8] sm:$0xff]  }
  0x27   :  { %192 = vmatprep.subr.bf16.mxu0 %v306_v0  ;;  %208 = vmatprep.mubr.msk.bf16.mxu0 %vm307_vm0, %v306_v0  ;;  %v223_v3 = vld [vmem:[#allocation5 + $0x10] sm:$0xff]   ;;  %v224_v4 = vld [vmem:[#allocation5 + $0x18] sm:$0xff]   ;;  %v225_v5 = vld [vmem:[#allocation5 + $0x20] sm:$0xff]   ;;  %s308_s1 = smov [#allocation7]  }
  0x28   :  { %193 = vmatpush3.bf16.msra.mxu0 %v221_v1  ;;  %v226_v6 = vld [vmem:[#allocation5 + $0x28] sm:$0xff]   ;;  %v227_v7 = vld [vmem:[#allocation5 + $0x30] sm:$0xff]   ;;  %v228_v8 = vld [vmem:[#allocation5 + $0x38] sm:$0xff]   ;;  %s161_s6 = sshll.u32 %s308_s1, 4  ;;  %s162_s6 = int_to_ptr.vmem [resolvable:$true] %s161_s6 }
  0x29   :  { %194 = vmatprep.subr.bf16.mxu0 %v306_v0  ;;  %v229_v9 = vld [vmem:[#allocation2] sm:$0xff]   ;;  %s274_s7 = scalar_lea.vmem %s162_s6, 256  ;;  %p279_p3 = scmp.lt.s32.totalorder %s162_s6, %s162_s6 }
  0x2a   :  { %p275_p2 = scmp.ne.s32.totalorder %s162_s6, %s274_s7  ;;  %p280_p4 = scmp.lt.s32.totalorder %s274_s7, %s274_s7 }
  0x2c   :  { %195 = vmatpush3.bf16.msra.mxu0 %v222_v2  ;;  %p281_p5 = por %p280_p4, %p279_p3 }
  0x2d   :  { %196 = vmatprep.subr.bf16.mxu0 %v306_v0 }
  0x2e   :  { %p282_p6 = pnand %p281_p5, %p275_p2 }
  0x30   :  { %197 = vmatpush3.bf16.msra.mxu0 %v223_v3 }
  0x31   :  { %198 = vmatprep.subr.bf16.mxu0 %v306_v0 }
  0x34   :  { %199 = vmatpush3.bf16.msra.mxu0 %v224_v4 }
  0x35   :  { %200 = vmatprep.subr.bf16.mxu0 %v306_v0 }
  0x38   :  { %201 = vmatpush3.bf16.msra.mxu0 %v225_v5 }
  0x39   :  { %202 = vmatprep.subr.bf16.mxu0 %v306_v0 }
  0x3c   :  { %203 = vmatpush3.bf16.msra.mxu0 %v226_v6 }
  0x3d   :  { %204 = vmatprep.subr.bf16.mxu0 %v306_v0 }
  0x40   :  { %205 = vmatpush3.bf16.msra.mxu0 %v227_v7 }
  0x41   :  { %206 = vmatprep.subr.bf16.mxu0 %v306_v0 }
  0x44   :  { %207 = vmatpush3.bf16.msra.mxu0 %v228_v8 }
  0x47   :  { %209 = vmatmul.mubr.bf16.vlgmr.msra.gmra.mrb[0].mxu0 %v229_v9 }
 0x11a   :  { %v147_v10 = vpop.f32.mrb[0].mxu0 }
 0x11b   :  { %154 = vst [vmem:[#allocation7] sm:$0xff] %v147_v10  ;;  %v210_v11 = vpop.f32.mrb[1].mxu0 }
 0x11c   :  { %v150_v12 = vpop.f32.mrb[2].mxu0 }
 0x11d   :  { %155 = vst [vmem:[#allocation7 + $0x8] sm:$0xff] %v150_v12  ;;  %v211_v13 = vpop.f32.mrb[3].mxu0 }
 0x11e   :  { %285 = shalt.err (!%p282_p6)
}
 0x11f   :  { %s286_s10 = scalar_lea.hbm %s364_s2, 256 }
 0x120   :  { %p287_p7 = scmp.ne.s32.totalorder %s364_s2, %s286_s10  ;;  %p290_p8 = scmp.lt.u32.totalorder %s286_s10, %s364_s2 }
 0x122   :  { %p292_p9 = pnand %p290_p8, %p287_p7 }
 0x124   :  { %295 = shalt.err (!%p292_p9)
}
 0x125   :  { %s309_s15 = smov 128   ;;  %s310_s16 = smov 8  }
 0x126   :  { %167 = dma.vmem_to_hbm [thread:$0]  %s162_s6, 256, %s364_s2, [#allocation4], %s309_s15, %s309_s15, %s310_s16  }
 0x127   :  { %300 = dma.done.wait [#allocation4], 256  }
 0x128   :  { %301 = vsyncadd [#allocation4], 4294967040 }
 0x129   :  { %171 = vsyncpa [#allocation3], 1 }
 0x12a   :  { %172 = vsyncpa [#allocation6], 1 }
 0x12b   :  { %173 = vsyncpa [#allocation4], 1 }

</bundles_post_ra>
